<compile_context>
chip_gen: v7x
topology: tpu7x:2x2x1
jax: 0.10.0
libtpu: 0.0.40
codegen_flags: <defaults>
</compile_context>

<pallas_src>
import functools

import jax
import jax.numpy as jnp
from jax import lax
from jax.experimental import pallas as pl
from jax.experimental.pallas import tpu as pltpu


def _lstm_fused_kernel(x_ref, wih_ref, whh_ref, b_ref, wfc_ref, bfc_ref,
                       out_ref, gx_ref, *, seq_len, hidden_size):
    """Fused LSTM forward + FC head, single grid step.

    x_ref   : (T, Bp, D_in)      time-major, batch padded to sublane multiple
    wih_ref : (D_in, 4H)         W_ih^T
    whh_ref : (H, 4H)            W_hh^T
    b_ref   : (1, 4H)            b_ih + b_hh
    wfc_ref : (H, Cp)            W_fc^T, lane-padded
    bfc_ref : (1, Cp)            b_fc, lane-padded
    out_ref : (Bp, Cp)           lane-dense logits
    gx_ref  : (T, Bp, 4H)        VMEM scratch for the hoisted input projection
    """
    T = seq_len
    H = hidden_size
    Bp = x_ref.shape[1]
    D_in = x_ref.shape[2]

    # ---- Phase 1: hoisted input projection — one big MXU matmul (M = T*Bp).
    x2d = x_ref[...].reshape(T * Bp, D_in)
    gx = jnp.dot(x2d, wih_ref[...],
                 preferred_element_type=jnp.float32) + b_ref[...]
    gx_ref[...] = gx.reshape(T, Bp, 4 * H)

    # ---- Phase 2: sequential recurrence; only the h-dependent matmul remains.
    whh = whh_ref[...]                               # hoisted load, reused every step

    def step(t, carry):
        h, c = carry
        gates = gx_ref[t] + jnp.dot(h, whh,
                                    preferred_element_type=jnp.float32)  # (Bp, 4H)
        # Full-vreg transcendentals (2 EUP ops) instead of 4 partial-lane ones.
        sig = jax.nn.sigmoid(gates)
        tah = jnp.tanh(gates)
        # PyTorch gate order: i, f, g, o.  (32-lane sub-slices; become free
        # lane-aligned slices once H is a multiple of 128.)
        i_g = sig[:, 0 * H:1 * H]
        f_g = sig[:, 1 * H:2 * H]
        g_g = tah[:, 2 * H:3 * H]
        o_g = sig[:, 3 * H:4 * H]
        c_new = f_g * c + i_g * g_g
        h_new = o_g * jnp.tanh(c_new)
        return h_new, c_new

    h0 = jnp.zeros((Bp, H), jnp.float32)
    c0 = jnp.zeros((Bp, H), jnp.float32)
    h_last, _ = lax.fori_loop(0, T, step, (h0, c0), unroll=True)

    # ---- Phase 3: FC head on the last hidden state; lane-dense (Bp, Cp) store.
    logits = jnp.dot(h_last, wfc_ref[...],
                     preferred_element_type=jnp.float32) + bfc_ref[...]
    out_ref[...] = logits.astype(out_ref.dtype)


def rnn_forward(x, params):
    """x: (B, T, D_in) float32.  Returns logits (B, num_classes)."""
    w_ih, w_hh, b_ih, b_hh, w_fc, b_fc = (
        params["w_ih"], params["w_hh"], params["b_ih"], params["b_hh"],
        params["w_fc"], params["b_fc"])

    B, T, D_in = x.shape
    four_h = w_ih.shape[0]
    H = four_h // 4
    C = w_fc.shape[0]

    SUB, LANE = 8, 128
    Bp = ((B + SUB - 1) // SUB) * SUB           # pad batch to f32 sublane count
    Cp = ((C + LANE - 1) // LANE) * LANE        # pad logits lane dim to 128

    # Glue: time-major layout, batch pad, pre-transposed weights, fused bias,
    # lane-padded FC head.
    x_tm = jnp.transpose(x, (1, 0, 2)).astype(jnp.float32)       # (T, B, D_in)
    x_tm = jnp.pad(x_tm, ((0, 0), (0, Bp - B), (0, 0)))          # (T, Bp, D_in)
    wih_t = jnp.transpose(w_ih).astype(jnp.float32)              # (D_in, 4H)
    whh_t = jnp.transpose(w_hh).astype(jnp.float32)              # (H, 4H)
    bias = (b_ih + b_hh).reshape(1, 4 * H).astype(jnp.float32)   # (1, 4H)
    wfc_t = jnp.pad(jnp.transpose(w_fc).astype(jnp.float32),
                    ((0, 0), (0, Cp - C)))                       # (H, Cp)
    bfc = jnp.pad(b_fc.reshape(1, C).astype(jnp.float32),
                  ((0, 0), (0, Cp - C)))                         # (1, Cp)

    kernel = functools.partial(_lstm_fused_kernel, seq_len=T, hidden_size=H)

    out_p = pl.pallas_call(
        kernel,
        out_shape=jax.ShapeDtypeStruct((Bp, Cp), jnp.float32),
        grid_spec=pltpu.PrefetchScalarGridSpec(
            num_scalar_prefetch=0,
            grid=(1,),                                  # whole forward = 1 step
            in_specs=[
                pl.BlockSpec((T, Bp, D_in), lambda i: (0, 0, 0)),   # x (time-major)
                pl.BlockSpec((D_in, 4 * H), lambda i: (0, 0)),      # W_ih^T
                pl.BlockSpec((H, 4 * H), lambda i: (0, 0)),         # W_hh^T
                pl.BlockSpec((1, 4 * H), lambda i: (0, 0)),         # fused bias
                pl.BlockSpec((H, Cp), lambda i: (0, 0)),            # W_fc^T (padded)
                pl.BlockSpec((1, Cp), lambda i: (0, 0)),            # b_fc (padded)
            ],
            out_specs=pl.BlockSpec((Bp, Cp), lambda i: (0, 0)),
            scratch_shapes=[
                pltpu.VMEM((T, Bp, 4 * H), jnp.float32),            # gates_x slab
            ],
        ),
        compiler_params=pltpu.CompilerParams(
            dimension_semantics=("arbitrary",)),        # recurrence is serial
    )(x_tm, wih_t, whh_t, bias, wfc_t, bfc)

    return out_p[:B, :C]


def rnn_reference(x, params):
    """Pure-JAX reference (lax.scan LSTM) for correctness checking."""
    w_ih, w_hh, b_ih, b_hh, w_fc, b_fc = (
        params["w_ih"], params["w_hh"], params["b_ih"], params["b_hh"],
        params["w_fc"], params["b_fc"])
    B = x.shape[0]
    H = w_hh.shape[1]

    def step(carry, x_t):
        h, c = carry
        gates = x_t @ w_ih.T + h @ w_hh.T + b_ih + b_hh
        i = jax.nn.sigmoid(gates[:, 0 * H:1 * H])
        f = jax.nn.sigmoid(gates[:, 1 * H:2 * H])
        g = jnp.tanh(gates[:, 2 * H:3 * H])
        o = jax.nn.sigmoid(gates[:, 3 * H:4 * H])
        c = f * c + i * g
        h = o * jnp.tanh(c)
        return (h, c), None

    h0 = jnp.zeros((B, H), jnp.float32)
    c0 = jnp.zeros((B, H), jnp.float32)
    (h_last, _), _ = lax.scan(step, (h0, c0), jnp.transpose(x, (1, 0, 2)))
    return h_last @ w_fc.T + b_fc


def init_params(key, input_size, hidden_size, num_classes):
    ks = jax.random.split(key, 6)
    k_lstm = 1.0 / jnp.sqrt(hidden_size)
    k_fc = 1.0 / jnp.sqrt(hidden_size)
    u = lambda k, shape, s: jax.random.uniform(k, shape, jnp.float32, -s, s)
    return {
        "w_ih": u(ks[0], (4 * hidden_size, input_size), k_lstm),
        "w_hh": u(ks[1], (4 * hidden_size, hidden_size), k_lstm),
        "b_ih": u(ks[2], (4 * hidden_size,), k_lstm),
        "b_hh": u(ks[3], (4 * hidden_size,), k_lstm),
        "w_fc": u(ks[4], (num_classes, hidden_size), k_fc),
        "b_fc": u(ks[5], (num_classes,), k_fc),
    }


if __name__ == "__main__":
    # Small shapes consistent with the module: input_size=13, num_classes=3,
    # num_layers=1; shrunk hidden (32) and short sequence (8) for a quick run.
    B, T, D_IN, HIDDEN, NUM_CLASSES = 2, 8, 13, 32, 3

    key = jax.random.PRNGKey(0)
    k_x, k_p = jax.random.split(key)
    x = jax.random.normal(k_x, (B, T, D_IN), jnp.float32)
    params = init_params(k_p, D_IN, HIDDEN, NUM_CLASSES)

    out = rnn_forward(x, params)
    out = jax.block_until_ready(out)

    ref = jax.block_until_ready(rnn_reference(x, params))
    assert out.shape == (B, NUM_CLASSES)
    assert jnp.allclose(out, ref, rtol=1e-3, atol=1e-3), (out, ref)

    print("KERNEL_OK")
</pallas_src>

<mosaic_0001>
module attributes {stable_mosaic.version = 11 : i64} {
  func.func @_lstm_fused_kernel(%arg0: i32, %arg1: memref<8x8x13xf32, #tpu.memory_space<vmem>>, %arg2: memref<13x128xf32, #tpu.memory_space<vmem>>, %arg3: memref<32x128xf32, #tpu.memory_space<vmem>>, %arg4: memref<1x128xf32, #tpu.memory_space<vmem>>, %arg5: memref<32x128xf32, #tpu.memory_space<vmem>>, %arg6: memref<1x128xf32, #tpu.memory_space<vmem>>, %arg7: memref<8x128xf32, #tpu.memory_space<vmem>>, %arg8: memref<8x8x128xf32, #tpu.memory_space<vmem>>) attributes {dimension_semantics = [#tpu.dimension_semantics<arbitrary>], iteration_bounds = array<i64: 1>, scalar_prefetch = 0 : i64, scratch_operands = 1 : i64, tpu.core_type = #tpu.core_type<tc>, window_params = [{pipeline_mode = #tpu.pipeline_mode<synchronous>, transform_indices = @transform_0, window_bounds = array<i64: 8, 8, 13>}, {pipeline_mode = #tpu.pipeline_mode<synchronous>, transform_indices = @transform_1, window_bounds = array<i64: 13, 128>}, {pipeline_mode = #tpu.pipeline_mode<synchronous>, transform_indices = @transform_2, window_bounds = array<i64: 32, 128>}, {pipeline_mode = #tpu.pipeline_mode<synchronous>, transform_indices = @transform_3, window_bounds = array<i64: 1, 128>}, {pipeline_mode = #tpu.pipeline_mode<synchronous>, transform_indices = @transform_4, window_bounds = array<i64: 32, 128>}, {pipeline_mode = #tpu.pipeline_mode<synchronous>, transform_indices = @transform_5, window_bounds = array<i64: 1, 128>}, {pipeline_mode = #tpu.pipeline_mode<synchronous>, transform_indices = @transform_6, window_bounds = array<i64: 8, 128>}]} {
    %c0 = arith.constant 0 : index
    %c0_0 = arith.constant 0 : index
    %c0_1 = arith.constant 0 : index
    %0 = vector.load %arg1[%c0, %c0_0, %c0_1] : memref<8x8x13xf32, #tpu.memory_space<vmem>>, vector<8x8x13xf32>
    %1 = vector.shape_cast %0 : vector<8x8x13xf32> to vector<64x13xf32>
    %c0_2 = arith.constant 0 : index
    %c0_3 = arith.constant 0 : index
    %2 = vector.load %arg2[%c0_2, %c0_3] : memref<13x128xf32, #tpu.memory_space<vmem>>, vector<13x128xf32>
    %cst = arith.constant dense<0.000000e+00> : vector<64x128xf32>
    %3 = tpu.matmul %1, %2, %cst {dimension_numbers = #tpu.dot_dimension_numbers<[1], [0], [0], [1], [0, 0, 1, 1], [], []>} : vector<64x13xf32>, vector<13x128xf32>, vector<64x128xf32> -> vector<64x128xf32>
    %c0_4 = arith.constant 0 : index
    %c0_5 = arith.constant 0 : index
    %4 = vector.load %arg4[%c0_4, %c0_5] : memref<1x128xf32, #tpu.memory_space<vmem>>, vector<1x128xf32>
    %5 = vector.broadcast %4 : vector<1x128xf32> to vector<64x128xf32>
    %6 = arith.addf %3, %5 : vector<64x128xf32>
    %7 = vector.shape_cast %6 : vector<64x128xf32> to vector<8x8x128xf32>
    %c0_6 = arith.constant 0 : index
    %c0_7 = arith.constant 0 : index
    %c0_8 = arith.constant 0 : index
    %8 = vector.load %arg8[%c0_6, %c0_7, %c0_8] : memref<8x8x128xf32, #tpu.memory_space<vmem>>, vector<8x8x128xf32>
    tpu.vector_store %arg8[%c0_6, %c0_7, %c0_8], %7 {strides = array<i32>} : memref<8x8x128xf32, #tpu.memory_space<vmem>>, vector<8x8x128xf32>,
    %c0_9 = arith.constant 0 : index
    %c0_10 = arith.constant 0 : index
    %9 = vector.load %arg3[%c0_9, %c0_10] : memref<32x128xf32, #tpu.memory_space<vmem>>, vector<32x128xf32>
    %cst_11 = arith.constant 0.000000e+00 : f32
    %10 = vector.broadcast %cst_11 : f32 to vector<8x32xf32>
    %cst_12 = arith.constant 0.000000e+00 : f32
    %11 = vector.broadcast %cst_12 : f32 to vector<8x32xf32>
    %c0_i32 = arith.constant 0 : i32
    %12 = arith.index_cast %c0_i32 : i32 to index
    %c0_13 = arith.constant 0 : index
    %c0_14 = arith.constant 0 : index
    %13 = vector.load %arg8[%12, %c0_13, %c0_14] : memref<8x8x128xf32, #tpu.memory_space<vmem>>, vector<1x8x128xf32>
    %14 = vector.shape_cast %13 : vector<1x8x128xf32> to vector<8x128xf32>
    %cst_15 = arith.constant dense<0.000000e+00> : vector<8x128xf32>
    %15 = tpu.matmul %10, %9, %cst_15 {dimension_numbers = #tpu.dot_dimension_numbers<[1], [0], [0], [1], [0, 0, 1, 1], [], []>} : vector<8x32xf32>, vector<32x128xf32>, vector<8x128xf32> -> vector<8x128xf32>
    %16 = arith.addf %14, %15 : vector<8x128xf32>
    %17 = arith.negf %16 : vector<8x128xf32>
    %18 = math.exp %17 : vector<8x128xf32>
    %cst_16 = arith.constant 1.000000e+00 : f32
    %19 = vector.broadcast %cst_16 : f32 to vector<8x128xf32>
    %20 = arith.addf %19, %18 : vector<8x128xf32>
    %21 = arith.divf %19, %20 : vector<8x128xf32>
    %22 = math.tanh %16 : vector<8x128xf32>
    %23 = vector.extract_strided_slice %21 {offsets = [0, 0], sizes = [8, 32], strides = [1, 1]} : vector<8x128xf32> to vector<8x32xf32>
    %24 = vector.extract_strided_slice %21 {offsets = [0, 32], sizes = [8, 32], strides = [1, 1]} : vector<8x128xf32> to vector<8x32xf32>
    %25 = vector.extract_strided_slice %22 {offsets = [0, 64], sizes = [8, 32], strides = [1, 1]} : vector<8x128xf32> to vector<8x32xf32>
    %26 = vector.extract_strided_slice %21 {offsets = [0, 96], sizes = [8, 32], strides = [1, 1]} : vector<8x128xf32> to vector<8x32xf32>
    %27 = arith.mulf %24, %11 : vector<8x32xf32>
    %28 = arith.mulf %23, %25 : vector<8x32xf32>
    %29 = arith.addf %27, %28 : vector<8x32xf32>
    %30 = math.tanh %29 : vector<8x32xf32>
    %31 = arith.mulf %26, %30 : vector<8x32xf32>
    %c1_i32 = arith.constant 1 : i32
    %32 = arith.index_cast %c1_i32 : i32 to index
    %c0_17 = arith.constant 0 : index
    %c0_18 = arith.constant 0 : index
    %33 = vector.load %arg8[%32, %c0_17, %c0_18] : memref<8x8x128xf32, #tpu.memory_space<vmem>>, vector<1x8x128xf32>
    %34 = vector.shape_cast %33 : vector<1x8x128xf32> to vector<8x128xf32>
    %cst_19 = arith.constant dense<0.000000e+00> : vector<8x128xf32>
    %35 = tpu.matmul %31, %9, %cst_19 {dimension_numbers = #tpu.dot_dimension_numbers<[1], [0], [0], [1], [0, 0, 1, 1], [], []>} : vector<8x32xf32>, vector<32x128xf32>, vector<8x128xf32> -> vector<8x128xf32>
    %36 = arith.addf %34, %35 : vector<8x128xf32>
    %37 = arith.negf %36 : vector<8x128xf32>
    %38 = math.exp %37 : vector<8x128xf32>
    %cst_20 = arith.constant 1.000000e+00 : f32
    %39 = vector.broadcast %cst_20 : f32 to vector<8x128xf32>
    %40 = arith.addf %39, %38 : vector<8x128xf32>
    %41 = arith.divf %39, %40 : vector<8x128xf32>
    %42 = math.tanh %36 : vector<8x128xf32>
    %43 = vector.extract_strided_slice %41 {offsets = [0, 0], sizes = [8, 32], strides = [1, 1]} : vector<8x128xf32> to vector<8x32xf32>
    %44 = vector.extract_strided_slice %41 {offsets = [0, 32], sizes = [8, 32], strides = [1, 1]} : vector<8x128xf32> to vector<8x32xf32>
    %45 = vector.extract_strided_slice %42 {offsets = [0, 64], sizes = [8, 32], strides = [1, 1]} : vector<8x128xf32> to vector<8x32xf32>
    %46 = vector.extract_strided_slice %41 {offsets = [0, 96], sizes = [8, 32], strides = [1, 1]} : vector<8x128xf32> to vector<8x32xf32>
    %47 = arith.mulf %44, %29 : vector<8x32xf32>
    %48 = arith.mulf %43, %45 : vector<8x32xf32>
    %49 = arith.addf %47, %48 : vector<8x32xf32>
    %50 = math.tanh %49 : vector<8x32xf32>
    %51 = arith.mulf %46, %50 : vector<8x32xf32>
    %c2_i32 = arith.constant 2 : i32
    %52 = arith.index_cast %c2_i32 : i32 to index
    %c0_21 = arith.constant 0 : index
    %c0_22 = arith.constant 0 : index
    %53 = vector.load %arg8[%52, %c0_21, %c0_22] : memref<8x8x128xf32, #tpu.memory_space<vmem>>, vector<1x8x128xf32>
    %54 = vector.shape_cast %53 : vector<1x8x128xf32> to vector<8x128xf32>
    %cst_23 = arith.constant dense<0.000000e+00> : vector<8x128xf32>
    %55 = tpu.matmul %51, %9, %cst_23 {dimension_numbers = #tpu.dot_dimension_numbers<[1], [0], [0], [1], [0, 0, 1, 1], [], []>} : vector<8x32xf32>, vector<32x128xf32>, vector<8x128xf32> -> vector<8x128xf32>
    %56 = arith.addf %54, %55 : vector<8x128xf32>
    %57 = arith.negf %56 : vector<8x128xf32>
    %58 = math.exp %57 : vector<8x128xf32>
    %cst_24 = arith.constant 1.000000e+00 : f32
    %59 = vector.broadcast %cst_24 : f32 to vector<8x128xf32>
    %60 = arith.addf %59, %58 : vector<8x128xf32>
    %61 = arith.divf %59, %60 : vector<8x128xf32>
    %62 = math.tanh %56 : vector<8x128xf32>
    %63 = vector.extract_strided_slice %61 {offsets = [0, 0], sizes = [8, 32], strides = [1, 1]} : vector<8x128xf32> to vector<8x32xf32>
    %64 = vector.extract_strided_slice %61 {offsets = [0, 32], sizes = [8, 32], strides = [1, 1]} : vector<8x128xf32> to vector<8x32xf32>
    %65 = vector.extract_strided_slice %62 {offsets = [0, 64], sizes = [8, 32], strides = [1, 1]} : vector<8x128xf32> to vector<8x32xf32>
    %66 = vector.extract_strided_slice %61 {offsets = [0, 96], sizes = [8, 32], strides = [1, 1]} : vector<8x128xf32> to vector<8x32xf32>
    %67 = arith.mulf %64, %49 : vector<8x32xf32>
    %68 = arith.mulf %63, %65 : vector<8x32xf32>
    %69 = arith.addf %67, %68 : vector<8x32xf32>
    %70 = math.tanh %69 : vector<8x32xf32>
    %71 = arith.mulf %66, %70 : vector<8x32xf32>
    %c3_i32 = arith.constant 3 : i32
    %72 = arith.index_cast %c3_i32 : i32 to index
    %c0_25 = arith.constant 0 : index
    %c0_26 = arith.constant 0 : index
    %73 = vector.load %arg8[%72, %c0_25, %c0_26] : memref<8x8x128xf32, #tpu.memory_space<vmem>>, vector<1x8x128xf32>
    %74 = vector.shape_cast %73 : vector<1x8x128xf32> to vector<8x128xf32>
    %cst_27 = arith.constant dense<0.000000e+00> : vector<8x128xf32>
    %75 = tpu.matmul %71, %9, %cst_27 {dimension_numbers = #tpu.dot_dimension_numbers<[1], [0], [0], [1], [0, 0, 1, 1], [], []>} : vector<8x32xf32>, vector<32x128xf32>, vector<8x128xf32> -> vector<8x128xf32>
    %76 = arith.addf %74, %75 : vector<8x128xf32>
    %77 = arith.negf %76 : vector<8x128xf32>
    %78 = math.exp %77 : vector<8x128xf32>
    %cst_28 = arith.constant 1.000000e+00 : f32
    %79 = vector.broadcast %cst_28 : f32 to vector<8x128xf32>
    %80 = arith.addf %79, %78 : vector<8x128xf32>
    %81 = arith.divf %79, %80 : vector<8x128xf32>
    %82 = math.tanh %76 : vector<8x128xf32>
    %83 = vector.extract_strided_slice %81 {offsets = [0, 0], sizes = [8, 32], strides = [1, 1]} : vector<8x128xf32> to vector<8x32xf32>
    %84 = vector.extract_strided_slice %81 {offsets = [0, 32], sizes = [8, 32], strides = [1, 1]} : vector<8x128xf32> to vector<8x32xf32>
    %85 = vector.extract_strided_slice %82 {offsets = [0, 64], sizes = [8, 32], strides = [1, 1]} : vector<8x128xf32> to vector<8x32xf32>
    %86 = vector.extract_strided_slice %81 {offsets = [0, 96], sizes = [8, 32], strides = [1, 1]} : vector<8x128xf32> to vector<8x32xf32>
    %87 = arith.mulf %84, %69 : vector<8x32xf32>
    %88 = arith.mulf %83, %85 : vector<8x32xf32>
    %89 = arith.addf %87, %88 : vector<8x32xf32>
    %90 = math.tanh %89 : vector<8x32xf32>
    %91 = arith.mulf %86, %90 : vector<8x32xf32>
    %c4_i32 = arith.constant 4 : i32
    %92 = arith.index_cast %c4_i32 : i32 to index
    %c0_29 = arith.constant 0 : index
    %c0_30 = arith.constant 0 : index
    %93 = vector.load %arg8[%92, %c0_29, %c0_30] : memref<8x8x128xf32, #tpu.memory_space<vmem>>, vector<1x8x128xf32>
    %94 = vector.shape_cast %93 : vector<1x8x128xf32> to vector<8x128xf32>
    %cst_31 = arith.constant dense<0.000000e+00> : vector<8x128xf32>
    %95 = tpu.matmul %91, %9, %cst_31 {dimension_numbers = #tpu.dot_dimension_numbers<[1], [0], [0], [1], [0, 0, 1, 1], [], []>} : vector<8x32xf32>, vector<32x128xf32>, vector<8x128xf32> -> vector<8x128xf32>
    %96 = arith.addf %94, %95 : vector<8x128xf32>
    %97 = arith.negf %96 : vector<8x128xf32>
    %98 = math.exp %97 : vector<8x128xf32>
    %cst_32 = arith.constant 1.000000e+00 : f32
    %99 = vector.broadcast %cst_32 : f32 to vector<8x128xf32>
    %100 = arith.addf %99, %98 : vector<8x128xf32>
    %101 = arith.divf %99, %100 : vector<8x128xf32>
    %102 = math.tanh %96 : vector<8x128xf32>
    %103 = vector.extract_strided_slice %101 {offsets = [0, 0], sizes = [8, 32], strides = [1, 1]} : vector<8x128xf32> to vector<8x32xf32>
    %104 = vector.extract_strided_slice %101 {offsets = [0, 32], sizes = [8, 32], strides = [1, 1]} : vector<8x128xf32> to vector<8x32xf32>
    %105 = vector.extract_strided_slice %102 {offsets = [0, 64], sizes = [8, 32], strides = [1, 1]} : vector<8x128xf32> to vector<8x32xf32>
    %106 = vector.extract_strided_slice %101 {offsets = [0, 96], sizes = [8, 32], strides = [1, 1]} : vector<8x128xf32> to vector<8x32xf32>
    %107 = arith.mulf %104, %89 : vector<8x32xf32>
    %108 = arith.mulf %103, %105 : vector<8x32xf32>
    %109 = arith.addf %107, %108 : vector<8x32xf32>
    %110 = math.tanh %109 : vector<8x32xf32>
    %111 = arith.mulf %106, %110 : vector<8x32xf32>
    %c5_i32 = arith.constant 5 : i32
    %112 = arith.index_cast %c5_i32 : i32 to index
    %c0_33 = arith.constant 0 : index
    %c0_34 = arith.constant 0 : index
    %113 = vector.load %arg8[%112, %c0_33, %c0_34] : memref<8x8x128xf32, #tpu.memory_space<vmem>>, vector<1x8x128xf32>
    %114 = vector.shape_cast %113 : vector<1x8x128xf32> to vector<8x128xf32>
    %cst_35 = arith.constant dense<0.000000e+00> : vector<8x128xf32>
    %115 = tpu.matmul %111, %9, %cst_35 {dimension_numbers = #tpu.dot_dimension_numbers<[1], [0], [0], [1], [0, 0, 1, 1], [], []>} : vector<8x32xf32>, vector<32x128xf32>, vector<8x128xf32> -> vector<8x128xf32>
    %116 = arith.addf %114, %115 : vector<8x128xf32>
    %117 = arith.negf %116 : vector<8x128xf32>
    %118 = math.exp %117 : vector<8x128xf32>
    %cst_36 = arith.constant 1.000000e+00 : f32
    %119 = vector.broadcast %cst_36 : f32 to vector<8x128xf32>
    %120 = arith.addf %119, %118 : vector<8x128xf32>
    %121 = arith.divf %119, %120 : vector<8x128xf32>
    %122 = math.tanh %116 : vector<8x128xf32>
    %123 = vector.extract_strided_slice %121 {offsets = [0, 0], sizes = [8, 32], strides = [1, 1]} : vector<8x128xf32> to vector<8x32xf32>
    %124 = vector.extract_strided_slice %121 {offsets = [0, 32], sizes = [8, 32], strides = [1, 1]} : vector<8x128xf32> to vector<8x32xf32>
    %125 = vector.extract_strided_slice %122 {offsets = [0, 64], sizes = [8, 32], strides = [1, 1]} : vector<8x128xf32> to vector<8x32xf32>
    %126 = vector.extract_strided_slice %121 {offsets = [0, 96], sizes = [8, 32], strides = [1, 1]} : vector<8x128xf32> to vector<8x32xf32>
    %127 = arith.mulf %124, %109 : vector<8x32xf32>
    %128 = arith.mulf %123, %125 : vector<8x32xf32>
    %129 = arith.addf %127, %128 : vector<8x32xf32>
    %130 = math.tanh %129 : vector<8x32xf32>
    %131 = arith.mulf %126, %130 : vector<8x32xf32>
    %c6_i32 = arith.constant 6 : i32
    %132 = arith.index_cast %c6_i32 : i32 to index
    %c0_37 = arith.constant 0 : index
    %c0_38 = arith.constant 0 : index
    %133 = vector.load %arg8[%132, %c0_37, %c0_38] : memref<8x8x128xf32, #tpu.memory_space<vmem>>, vector<1x8x128xf32>
    %134 = vector.shape_cast %133 : vector<1x8x128xf32> to vector<8x128xf32>
    %cst_39 = arith.constant dense<0.000000e+00> : vector<8x128xf32>
    %135 = tpu.matmul %131, %9, %cst_39 {dimension_numbers = #tpu.dot_dimension_numbers<[1], [0], [0], [1], [0, 0, 1, 1], [], []>} : vector<8x32xf32>, vector<32x128xf32>, vector<8x128xf32> -> vector<8x128xf32>
    %136 = arith.addf %134, %135 : vector<8x128xf32>
    %137 = arith.negf %136 : vector<8x128xf32>
    %138 = math.exp %137 : vector<8x128xf32>
    %cst_40 = arith.constant 1.000000e+00 : f32
    %139 = vector.broadcast %cst_40 : f32 to vector<8x128xf32>
    %140 = arith.addf %139, %138 : vector<8x128xf32>
    %141 = arith.divf %139, %140 : vector<8x128xf32>
    %142 = math.tanh %136 : vector<8x128xf32>
    %143 = vector.extract_strided_slice %141 {offsets = [0, 0], sizes = [8, 32], strides = [1, 1]} : vector<8x128xf32> to vector<8x32xf32>
    %144 = vector.extract_strided_slice %141 {offsets = [0, 32], sizes = [8, 32], strides = [1, 1]} : vector<8x128xf32> to vector<8x32xf32>
    %145 = vector.extract_strided_slice %142 {offsets = [0, 64], sizes = [8, 32], strides = [1, 1]} : vector<8x128xf32> to vector<8x32xf32>
    %146 = vector.extract_strided_slice %141 {offsets = [0, 96], sizes = [8, 32], strides = [1, 1]} : vector<8x128xf32> to vector<8x32xf32>
    %147 = arith.mulf %144, %129 : vector<8x32xf32>
    %148 = arith.mulf %143, %145 : vector<8x32xf32>
    %149 = arith.addf %147, %148 : vector<8x32xf32>
    %150 = math.tanh %149 : vector<8x32xf32>
    %151 = arith.mulf %146, %150 : vector<8x32xf32>
    %c7_i32 = arith.constant 7 : i32
    %152 = arith.index_cast %c7_i32 : i32 to index
    %c0_41 = arith.constant 0 : index
    %c0_42 = arith.constant 0 : index
    %153 = vector.load %arg8[%152, %c0_41, %c0_42] : memref<8x8x128xf32, #tpu.memory_space<vmem>>, vector<1x8x128xf32>
    %154 = vector.shape_cast %153 : vector<1x8x128xf32> to vector<8x128xf32>
    %cst_43 = arith.constant dense<0.000000e+00> : vector<8x128xf32>
    %155 = tpu.matmul %151, %9, %cst_43 {dimension_numbers = #tpu.dot_dimension_numbers<[1], [0], [0], [1], [0, 0, 1, 1], [], []>} : vector<8x32xf32>, vector<32x128xf32>, vector<8x128xf32> -> vector<8x128xf32>
    %156 = arith.addf %154, %155 : vector<8x128xf32>
    %157 = arith.negf %156 : vector<8x128xf32>
    %158 = math.exp %157 : vector<8x128xf32>
    %cst_44 = arith.constant 1.000000e+00 : f32
    %159 = vector.broadcast %cst_44 : f32 to vector<8x128xf32>
    %160 = arith.addf %159, %158 : vector<8x128xf32>
    %161 = arith.divf %159, %160 : vector<8x128xf32>
    %162 = math.tanh %156 : vector<8x128xf32>
    %163 = vector.extract_strided_slice %161 {offsets = [0, 0], sizes = [8, 32], strides = [1, 1]} : vector<8x128xf32> to vector<8x32xf32>
    %164 = vector.extract_strided_slice %161 {offsets = [0, 32], sizes = [8, 32], strides = [1, 1]} : vector<8x128xf32> to vector<8x32xf32>
    %165 = vector.extract_strided_slice %162 {offsets = [0, 64], sizes = [8, 32], strides = [1, 1]} : vector<8x128xf32> to vector<8x32xf32>
    %166 = vector.extract_strided_slice %161 {offsets = [0, 96], sizes = [8, 32], strides = [1, 1]} : vector<8x128xf32> to vector<8x32xf32>
    %167 = arith.mulf %164, %149 : vector<8x32xf32>
    %168 = arith.mulf %163, %165 : vector<8x32xf32>
    %169 = arith.addf %167, %168 : vector<8x32xf32>
    %170 = math.tanh %169 : vector<8x32xf32>
    %171 = arith.mulf %166, %170 : vector<8x32xf32>
    %c8_i32 = arith.constant 8 : i32
    %c0_45 = arith.constant 0 : index
    %c0_46 = arith.constant 0 : index
    %172 = vector.load %arg5[%c0_45, %c0_46] : memref<32x128xf32, #tpu.memory_space<vmem>>, vector<32x128xf32>
    %cst_47 = arith.constant dense<0.000000e+00> : vector<8x128xf32>
    %173 = tpu.matmul %171, %172, %cst_47 {dimension_numbers = #tpu.dot_dimension_numbers<[1], [0], [0], [1], [0, 0, 1, 1], [], []>} : vector<8x32xf32>, vector<32x128xf32>, vector<8x128xf32> -> vector<8x128xf32>
    %c0_48 = arith.constant 0 : index
    %c0_49 = arith.constant 0 : index
    %174 = vector.load %arg6[%c0_48, %c0_49] : memref<1x128xf32, #tpu.memory_space<vmem>>, vector<1x128xf32>
    %175 = vector.broadcast %174 : vector<1x128xf32> to vector<8x128xf32>
    %176 = arith.addf %173, %175 : vector<8x128xf32>
    %c0_50 = arith.constant 0 : index
    %c0_51 = arith.constant 0 : index
    %177 = vector.load %arg7[%c0_50, %c0_51] : memref<8x128xf32, #tpu.memory_space<vmem>>, vector<8x128xf32>
    tpu.vector_store %arg7[%c0_50, %c0_51], %176 {strides = array<i32>} : memref<8x128xf32, #tpu.memory_space<vmem>>, vector<8x128xf32>,
    return
  }
  func.func @transform_0(%arg0: i32) -> (i32, i32, i32) {
    %c0_i32 = arith.constant 0 : i32
    %c0_i32_0 = arith.constant 0 : i32
    %c0_i32_1 = arith.constant 0 : i32
    %c0_i32_2 = arith.constant 0 : i32
    return %c0_i32, %c0_i32_0, %c0_i32_1 : i32, i32, i32
  }
  func.func @transform_1(%arg0: i32) -> (i32, i32) {
    %c0_i32 = arith.constant 0 : i32
    %c0_i32_0 = arith.constant 0 : i32
    %c0_i32_1 = arith.constant 0 : i32
    return %c0_i32, %c0_i32_0 : i32, i32
  }
  func.func @transform_2(%arg0: i32) -> (i32, i32) {
    %c0_i32 = arith.constant 0 : i32
    %c0_i32_0 = arith.constant 0 : i32
    %c0_i32_1 = arith.constant 0 : i32
    return %c0_i32, %c0_i32_0 : i32, i32
  }
  func.func @transform_3(%arg0: i32) -> (i32, i32) {
    %c0_i32 = arith.constant 0 : i32
    %c0_i32_0 = arith.constant 0 : i32
    %c0_i32_1 = arith.constant 0 : i32
    return %c0_i32, %c0_i32_0 : i32, i32
  }
  func.func @transform_4(%arg0: i32) -> (i32, i32) {
    %c0_i32 = arith.constant 0 : i32
    %c0_i32_0 = arith.constant 0 : i32
    %c0_i32_1 = arith.constant 0 : i32
    return %c0_i32, %c0_i32_0 : i32, i32
  }
  func.func @transform_5(%arg0: i32) -> (i32, i32) {
    %c0_i32 = arith.constant 0 : i32
    %c0_i32_0 = arith.constant 0 : i32
    %c0_i32_1 = arith.constant 0 : i32
    return %c0_i32, %c0_i32_0 : i32, i32
  }
  func.func @transform_6(%arg0: i32) -> (i32, i32) {
    %c0_i32 = arith.constant 0 : i32
    %c0_i32_0 = arith.constant 0 : i32
    %c0_i32_1 = arith.constant 0 : i32
    return %c0_i32, %c0_i32_0 : i32, i32
  }
}

</mosaic_0001>

<bundles_post_ra>
// kernel: tpu_custom_call.1
= control target key start
LH: loop header
LB: loop body
LE: loop exit
PB: predicated region body
PF: predicated region fallthrough
CT: control target
= control target key end

     0   :  { %11 = vsyncpa [#allocation4], 0  ;;  %s1879_s0 = inlined_call_operand.hbm [shape: f32[8,8,13], index: 0, kind: input, shape index: {}]   ;;  %s1880_s1 = inlined_call_operand.hbm [shape: f32[13,128], index: 1, kind: input, shape index: {}]   ;;  %s1881_s2 = inlined_call_operand.hbm [shape: f32[32,128], index: 2, kind: input, shape index: {}]   ;;  %s1882_s3 = inlined_call_operand.vmem [shape: f32[1,128], index: 3, kind: input, shape index: {}]   ;;  %s1883_s4 = inlined_call_operand.hbm [shape: f32[32,128], index: 4, kind: input, shape index: {}]   ;;  %s1884_s5 = inlined_call_operand.vmem [shape: f32[1,128], index: 5, kind: input, shape index: {}]   ;;  %s1885_s6 = inlined_call_operand.hbm [shape: f32[8,128], index: 6, kind: output, shape index: {}]  }
   0x1   :  { %12 = vsyncpa [#allocation7], 0 }
   0x2   :  { %13 = vsyncpa [#allocation10], 0 }
   0x3   :  { %14 = vsyncpa [#allocation5], 0  ;;  %s1612_s21 = smov [#allocation6]   ;;  %s1613_s23 = smov [#allocation3]  }
   0x4   :  { %s32_s22 = sshll.u32 %s1612_s21, 4  ;;  %s20_s24 = sshll.u32 %s1613_s23, 4  ;;  %s33_s22 = int_to_ptr.vmem [resolvable:$true] %s32_s22  ;;  %s1660_s24 = int_to_ptr.vmem [resolvable:$true] %s20_s24 }
   0x5   :  { %s1494_s27 = scalar_lea.hbm %s1880_s1, 256 }
   0x6   :  { %p1495_p0 = scmp.ne.s32.totalorder %s1880_s1, %s1494_s27  ;;  %p1498_p1 = scmp.lt.u32.totalorder %s1494_s27, %s1880_s1 }
   0x8   :  { %p1500_p2 = pnand %p1498_p1, %p1495_p0 }
   0xa   :  { %1503 = shalt.err (!%p1500_p2)
}
   0xb   :  { %s1504_s8 = scalar_lea.vmem %s33_s22, 256  ;;  %p1509_p4 = scmp.lt.s32.totalorder %s33_s22, %s33_s22 }
   0xc   :  { %p1505_p3 = scmp.ne.s32.totalorder %s33_s22, %s1504_s8  ;;  %p1510_p5 = scmp.lt.s32.totalorder %s1504_s8, %s1504_s8 }
   0xe   :  { %p1511_p6 = por %p1510_p5, %p1509_p4 }
  0x10   :  { %p1512_p7 = pnand %p1511_p6, %p1505_p3 }
  0x12   :  { %1515 = shalt.err (!%p1512_p7)
}
  0x13   :  { %s1614_s9 = smov 128   ;;  %s1615_s10 = smov 8  }
  0x14   :  { %38 = dma.hbm_to_vmem [thread:$0]  %s1880_s1, 256, %s33_s22, [#allocation7], %s1614_s9, %s1614_s9, %s1615_s10  }
  0x15   :  { %s1516_s15 = scalar_lea.hbm %s1879_s0, 1024 }
  0x16   :  { %p1517_p8 = scmp.ne.s32.totalorder %s1879_s0, %s1516_s15  ;;  %p1520_p9 = scmp.lt.u32.totalorder %s1516_s15, %s1879_s0 }
  0x18   :  { %p1522_p10 = pnand %p1520_p9, %p1517_p8 }
  0x1a   :  { %1525 = shalt.err (!%p1522_p10)
}
  0x1b   :  { %s1526_s20 = scalar_lea.vmem %s1660_s24, 1024  ;;  %p1531_p12 = scmp.lt.s32.totalorder %s1660_s24, %s1660_s24 }
  0x1c   :  { %p1527_p11 = scmp.ne.s32.totalorder %s1660_s24, %s1526_s20  ;;  %p1532_p13 = scmp.lt.s32.totalorder %s1526_s20, %s1526_s20 }
  0x1e   :  { %p1533_p0 = por %p1532_p13, %p1531_p12 }
  0x20   :  { %p1534_p1 = pnand %p1533_p0, %p1527_p11 }
  0x22   :  { %1537 = shalt.err (!%p1534_p1)
}
  0x23   :  { %26 = dma.hbm_to_vmem [thread:$0]  %s1879_s0, 1024, %s1660_s24, [#allocation4], %s1614_s9, %s1614_s9, %s1615_s10  }
  0x24   :  { %s1616_s22 = smov [#allocation8]   ;;  %s1617_s25 = smov [#allocation9]  }
  0x25   :  { %s44_s23 = sshll.u32 %s1616_s22, 4  ;;  %s58_s26 = sshll.u32 %s1617_s25, 4  ;;  %s45_s23 = int_to_ptr.vmem [resolvable:$true] %s44_s23  ;;  %s1697_s26 = int_to_ptr.vmem [resolvable:$true] %s58_s26 }
  0x26   :  { %s1538_s29 = scalar_lea.hbm %s1881_s2, 512 }
  0x27   :  { %p1539_p2 = scmp.ne.s32.totalorder %s1881_s2, %s1538_s29  ;;  %p1542_p3 = scmp.lt.u32.totalorder %s1538_s29, %s1881_s2 }
  0x29   :  { %p1544_p4 = pnand %p1542_p3, %p1539_p2 }
  0x2b   :  { %1547 = shalt.err (!%p1544_p4)
}
  0x2c   :  { %s1548_s0 = scalar_lea.vmem %s45_s23, 512  ;;  %p1553_p6 = scmp.lt.s32.totalorder %s45_s23, %s45_s23 }
  0x2d   :  { %p1549_p5 = scmp.ne.s32.totalorder %s45_s23, %s1548_s0  ;;  %p1554_p7 = scmp.lt.s32.totalorder %s1548_s0, %s1548_s0 }
  0x2f   :  { %p1555_p8 = por %p1554_p7, %p1553_p6 }
  0x31   :  { %p1556_p9 = pnand %p1555_p8, %p1549_p5 }
  0x33   :  { %1559 = shalt.err (!%p1556_p9)
}
  0x34   :  { %50 = dma.hbm_to_vmem [thread:$0]  %s1881_s2, 512, %s45_s23, [#allocation7], %s1614_s9, %s1614_s9, %s1615_s10  }
  0x35   :  { %s1560_s15 = scalar_lea.hbm %s1883_s4, 512 }
  0x36   :  { %p1561_p10 = scmp.ne.s32.totalorder %s1883_s4, %s1560_s15  ;;  %p1564_p11 = scmp.lt.u32.totalorder %s1560_s15, %s1883_s4 }
  0x38   :  { %p1566_p12 = pnand %p1564_p11, %p1561_p10 }
  0x3a   :  { %1569 = shalt.err (!%p1566_p12)
}
  0x3b   :  { %s1570_s20 = scalar_lea.vmem %s1697_s26, 512  ;;  %p1575_p0 = scmp.lt.s32.totalorder %s1697_s26, %s1697_s26 }
  0x3c   :  { %p1571_p13 = scmp.ne.s32.totalorder %s1697_s26, %s1570_s20  ;;  %p1576_p1 = scmp.lt.s32.totalorder %s1570_s20, %s1570_s20 }
  0x3e   :  { %p1577_p2 = por %p1576_p1, %p1575_p0 }
  0x40   :  { %p1578_p3 = pnand %p1577_p2, %p1571_p13 }
  0x42   :  { %1581 = shalt.err (!%p1578_p3)
}
  0x43   :  { %64 = dma.hbm_to_vmem [thread:$0]  %s1883_s4, 512, %s1697_s26, [#allocation10], %s1614_s9, %s1614_s9, %s1615_s10  }
  0x44   :  { %1604 = dma.done.wait [#allocation4], 1024  }
  0x45   :  { %1605 = vsyncadd [#allocation4], 4294966272 }
  0x46   :  { %1606 = dma.done.wait [#allocation7], 768  }
  0x47   :  { %1607 = vsyncadd [#allocation7], 4294966528 }
  0x48   :  { %1608 = dma.done.wait [#allocation10], 512  }
  0x49   :  { %1609 = vsyncadd [#allocation10], 4294966784  ;;  %v1618_v0 = vmov 0.0|0.0   ;;  %vm1619_vm0 = vmmov 0   ;;  %v1620_v1 = vmov 0.0   ;;  %vm121_vm1 = vcmask 1044480  }
  0x4a   :  { %1363 = vmatprep.subr.bf16.mxu1 %v1618_v0  ;;  %1266 = vmatprep.mubr.msk.f32.mxu1 %vm1619_vm0, %v1620_v1  ;;  %vm1621_vm2 = vmmov 1   ;;  %vm96_vm4 = vcmask 105472   ;;  %v87_v2 = vld [vmem:[#allocation6] sm:$0xff]  ;;  %v88_v3 = vld [vmem:[#allocation6 + $0x8] sm:$0x1f]  ;;  %v238_v4 = vld [vmem:[#allocation8] sm:$0xff] }
  0x4b   :  { %vm1358_vm3 = vmpackc.low %vm121_vm1, %vm1621_vm2  ;;  %v1357_v5 = vpack.c.bf16 %v88_v3, %v87_v2  ;;  %v239_v6 = vld [vmem:[#allocation8 + $0x8] sm:$0xff]  ;;  %v79_v7 = vld [vmem:[#allocation3] sm:$0xff]  ;;  %s1622_s10 = smov 64   ;;  %vm243_vm5 = vcmask 261120   ;;  %s1624_s23 = smov [#allocation11]  }
  0x4c   :  { %v1737_v8 = vpack.c.bf16 %v239_v6, %v238_v4  ;;  %1246 = vmatprep.mubr.msk.f32.mxu0 %vm96_vm4, %v79_v7  ;;  %v240_v9 = vld [vmem:[#allocation8 + $0x10] sm:$0xff]  ;;  %v241_v10 = vld [vmem:[#allocation8 + $0x18] sm:$0xff]  ;;  %v81_v48 = vld [vmem:[#allocation3 + $0x10] sm:$0xff]  ;;  %s1149_s25 = sshll.u32 %s1624_s23, 4  ;;  %s1150_s25 = int_to_ptr.vmem [resolvable:$true] %s1149_s25 }
  0x4d   :  { %1359 = vmatprep.subr.msk.bf16.mxu0 %vm1358_vm3, %v1357_v5  ;;  %v80_v11 = vld [vmem:[#allocation3 + $0x8] sm:$0xff]  ;;  %v1741_v12 = vpack.c.bf16 %v241_v10, %v240_v9  ;;  %v1762_v13 = vld [vmem:[%s1882_s3] ss:$0 sm:$0xff]  ;;  %s1623_s3 = smov 32   ;;  %v82_v49 = vld [vmem:[#allocation3 + $0x18] sm:$0xff]  ;;  %s1582_s26 = scalar_lea.vmem %s1150_s25, 128 }
  0x4e   :  { %1365 = vmatpush3.bf16.msra.mxu1 %v1737_v8  ;;  %1362 = vmatpush3.bf16.msk.msra.mxu0 %vm1358_vm3, %v1357_v5  ;;  %v83_v50 = vld [vmem:[#allocation3 + $0x20] sm:$0xff]  ;;  %v84_v51 = vld [vmem:[#allocation3 + $0x28] sm:$0xff]  ;;  %v85_v52 = vld [vmem:[#allocation3 + $0x30] sm:$0xff]  ;;  %p1583_p4 = scmp.ne.s32.totalorder %s1150_s25, %s1582_s26  ;;  %p1587_p5 = scmp.lt.s32.totalorder %s1150_s25, %s1150_s25 }
  0x4f   :  { %1366 = vmatprep.subr.bf16.mxu1 %v1618_v0  ;;  %1375 = vmatprep.subr.bf16.mxu0 %v1618_v0  ;;  %v86_v53 = vld [vmem:[#allocation3 + $0x38] sm:$0xff]  ;;  %p1588_p6 = scmp.lt.s32.totalorder %s1582_s26, %s1582_s26 }
  0x51   :  { %1247 = vmatmul.mubr.msk.f32.vlgmr.msra.gmra.mrb[0].mxu0 %vm96_vm4, %v80_v11  ;;  %p1589_p7 = por %p1588_p6, %p1587_p5 }
  0x52   :  { %1368 = vmatpush3.bf16.msra.mxu1 %v1741_v12  ;;  %1377 = vmatpush3.bf16.msra.mxu0 %v1737_v8 }
  0x53   :  { %1369 = vmatprep.subr.bf16.mxu1 %v1618_v0  ;;  %1378 = vmatprep.subr.bf16.mxu0 %v1618_v0  ;;  %p1590_p8 = pnand %p1589_p7, %p1583_p4 }
  0x54   :  { %1249 = vmatprep.mubr.msk.f32.mxu0 %vm96_vm4, %v81_v48 }
  0x55   :  { %1267 = vmatmul.mubr.f32.vlgmr.msra.gmra.mrb[0].mxu1 %v1620_v1  ;;  %1250 = vmatmul.mubr.msk.f32.gmra.mrb[2].mxu0 %vm96_vm4, %v82_v49 }
  0x56   :  { %1371 = vmatpush3.bf16.msra.mxu1 %v1737_v8  ;;  %1277 = vmatprep.mubr.msk.f32.mxu1 %vm1619_vm0, %v1620_v1 }
  0x57   :  { %1372 = vmatprep.subr.bf16.mxu1 %v1618_v0  ;;  %1380 = vmatpush3.bf16.msra.mxu0 %v1741_v12 }
  0x58   :  { %1387 = vmatprep.subr.bf16.mxu0 %v1618_v0  ;;  %1252 = vmatprep.mubr.msk.f32.mxu0 %vm96_vm4, %v83_v50 }
  0x59   :  { %1253 = vmatmul.mubr.msk.f32.gmra.mrb[4].mxu0 %vm96_vm4, %v84_v51 }
  0x5a   :  { %1374 = vmatpush3.bf16.msra.mxu1 %v1741_v12  ;;  %1255 = vmatprep.mubr.msk.f32.mxu0 %vm96_vm4, %v85_v52 }
  0x5b   :  { %1381 = vmatprep.subr.bf16.mxu1 %v1618_v0 }
  0x5d   :  { %1256 = vmatmul.mubr.msk.f32.gmra.mrb[6].mxu0 %vm96_vm4, %v86_v53 }
  0x5e   :  { %1288 = vmatprep.mubr.msk.f32.mxu0 %vm1619_vm0, %v1620_v1 }
 0x124   :  { %v1248_v14 = vpop.f32.mrb[0].mxu0 }
 0x125   :  { %v191_v15 = vpop.f32.mrb[1].mxu0  ;;  %v197_v34 = vadd.f32 %v1248_v14, %v1762_v13 }
 0x126   :  { %v192_v16 = vadd.f32 %v1762_v13, %v191_v15 }
 0x128   :  { %v313_v17 = vpop.f32.mrb[0].mxu1  ;;  %v1251_v57 = vpop.f32.mrb[2].mxu0 }
 0x129   :  { %v317_v18 = vadd.f32 %v313_v17, %v192_v16  ;;  %v1268_v19 = vpop.f32.mrb[1].mxu1  ;;  %v201_v58 = vpop.f32.mrb[3].mxu0 }
 0x12a   :  { %v202_v2 = vadd.f32 %v1762_v13, %v201_v58 }
 0x12b   :  { %1430 = vtanh.f32 %v317_v18  ;;  %v1170_v21 = vmul.f32 -1.442695, %v317_v18 }
 0x12c   :  { %v1789_v59 = vpop.f32.mrb[4].mxu0 }
 0x12d   :  { %1432 = vpow2.f32 %v1170_v21  ;;  %v1791_v60 = vpop.f32.mrb[5].mxu0 }
 0x130   :  { %v1793_v61 = vpop.f32.mrb[6].mxu0 }
 0x131   :  { %v1795_v62 = vpop.f32.mrb[7].mxu0 }
 0x135   :  { %v1431_v20 = vpop.eup %1430 }
 0x136   :  { %327 = vrot.lane.b32.xlu0 %v1431_v20, %s1622_s10 }
 0x137   :  { %v1433_v22 = vpop.eup %1432 }
 0x138   :  { %v321_v23 = vadd.f32 1.0, %v1433_v22 }
 0x13a   :  { %1434 = vrcp.f32 %v321_v23  ;;  %v207_v23 = vadd.f32 %v1251_v57, %v1762_v13 }
 0x144   :  { %v1435_v24 = vpop.eup %1434 }
 0x145   :  { %v325_v27 = vmul.f32 0.0, %v1435_v24 }
 0x1a8   :  { %v328_v25 = vpop.permute.xlu0 %327 }
 0x1a9   :  { %v330_v26 = vmul.f32 %v1435_v24, %v328_v25 }
 0x1ab   :  { %332 = vrot.lane.b32.xlu0 %v330_v26, %s1623_s3 }
 0x21d   :  { %v333_v28 = vpop.permute.xlu0 %332 }
 0x21e   :  { %v335_v29 = vadd.f32 %v333_v28, %v325_v27 }
 0x220   :  { %1436 = vtanh.f32 %v335_v29 }
 0x22a   :  { %v1437_v30 = vpop.eup %1436 }
 0x22b   :  { %338 = vrot.lane.b32.xlu1 %v1437_v30, %s1622_s10 }
 0x29d   :  { %v339_v31 = vpop.permute.xlu1 %338 }
 0x29e   :  { %v341_v32 = vmul.f32 %v1435_v24, %v339_v31 }
 0x2a0   :  { %345 = vrot.lane.b32.xlu1 %v341_v32, %s1623_s3 }
 0x312   :  { %v346_v33 = vpop.permute.xlu1 %345 }
 0x313   :  { %1278 = vmatmul.mubr.msk.f32.vlgmr.msra.gmra.mrb[2].mxu1 %vm243_vm5, %v346_v33 }
 0x314   :  { %1383 = vmatpush3.bf16.msra.mxu1 %v1737_v8  ;;  %1299 = vmatprep.mubr.msk.f32.mxu1 %vm1619_vm0, %v1620_v1 }
 0x315   :  { %1384 = vmatprep.subr.bf16.mxu1 %v1618_v0 }
 0x318   :  { %1386 = vmatpush3.bf16.msra.mxu1 %v1741_v12 }
 0x319   :  { %1393 = vmatprep.subr.bf16.mxu1 %v1618_v0 }
 0x3e6   :  { %v415_v35 = vpop.f32.mrb[2].mxu1 }
 0x3e7   :  { %v419_v36 = vadd.f32 %v415_v35, %v197_v34  ;;  %v1279_v37 = vpop.f32.mrb[3].mxu1 }
 0x3e9   :  { %1438 = vtanh.f32 %v419_v36  ;;  %v1172_v39 = vmul.f32 -1.442695, %v419_v36 }
 0x3eb   :  { %1440 = vpow2.f32 %v1172_v39 }
 0x3f3   :  { %v1439_v38 = vpop.eup %1438 }
 0x3f4   :  { %429 = vrot.lane.b32.xlu0 %v1439_v38, %s1622_s10 }
 0x3f5   :  { %v1441_v40 = vpop.eup %1440 }
 0x3f6   :  { %v423_v41 = vadd.f32 1.0, %v1441_v40 }
 0x3f8   :  { %1442 = vrcp.f32 %v423_v41  ;;  %v212_v41 = vadd.f32 %v1762_v13, %v1791_v60  ;;  %v217_v60 = vadd.f32 %v1789_v59, %v1762_v13 }
 0x402   :  { %v1443_v42 = vpop.eup %1442 }
 0x403   :  { %v427_v45 = vmul.f32 %v1443_v42, %v335_v29 }
 0x466   :  { %v430_v43 = vpop.permute.xlu0 %429 }
 0x467   :  { %v432_v44 = vmul.f32 %v1443_v42, %v430_v43 }
 0x469   :  { %434 = vrot.lane.b32.xlu1 %v432_v44, %s1623_s3 }
 0x4db   :  { %v435_v46 = vpop.permute.xlu1 %434 }
 0x4dc   :  { %v437_v47 = vadd.f32 %v435_v46, %v427_v45 }
 0x4de   :  { %1444 = vtanh.f32 %v437_v47 }
 0x4e8   :  { %v1445_v54 = vpop.eup %1444 }
 0x4e9   :  { %440 = vrot.lane.b32.xlu0 %v1445_v54, %s1622_s10 }
 0x55b   :  { %v441_v55 = vpop.permute.xlu0 %440 }
 0x55c   :  { %v443_v56 = vmul.f32 %v1443_v42, %v441_v55 }
 0x55e   :  { %447 = vrot.lane.b32.xlu1 %v443_v56, %s1623_s3 }
 0x5d0   :  { %v448_v63 = vpop.permute.xlu1 %447 }
 0x5d1   :  { %1289 = vmatmul.mubr.msk.f32.vlgmr.msra.gmra.mrb[8].mxu0 %vm243_vm5, %v448_v63 }
 0x5d2   :  { %1389 = vmatpush3.bf16.msra.mxu0 %v1737_v8  ;;  %1310 = vmatprep.mubr.msk.f32.mxu0 %vm1619_vm0, %v1620_v1 }
 0x5d3   :  { %1390 = vmatprep.subr.bf16.mxu0 %v1618_v0 }
 0x5d6   :  { %1392 = vmatpush3.bf16.msra.mxu0 %v1741_v12 }
 0x5d7   :  { %1399 = vmatprep.subr.bf16.mxu0 %v1618_v0 }
 0x6a4   :  { %v517_v3 = vpop.f32.mrb[8].mxu0 }
 0x6a5   :  { %v521_v4 = vadd.f32 %v517_v3, %v202_v2  ;;  %v1290_v5 = vpop.f32.mrb[9].mxu0 }
 0x6a7   :  { %1446 = vtanh.f32 %v521_v4  ;;  %v1174_v7 = vmul.f32 -1.442695, %v521_v4 }
 0x6a9   :  { %1448 = vpow2.f32 %v1174_v7 }
 0x6b1   :  { %v1447_v6 = vpop.eup %1446 }
 0x6b2   :  { %531 = vrot.lane.b32.xlu0 %v1447_v6, %s1622_s10 }
 0x6b3   :  { %v1449_v9 = vpop.eup %1448 }
 0x6b4   :  { %v525_v10 = vadd.f32 1.0, %v1449_v9 }
 0x6b6   :  { %1450 = vrcp.f32 %v525_v10 }
 0x6c0   :  { %v1451_v11 = vpop.eup %1450 }
 0x6c1   :  { %v529_v16 = vmul.f32 %v1451_v11, %v437_v47 }
 0x724   :  { %v532_v14 = vpop.permute.xlu0 %531 }
 0x725   :  { %v534_v15 = vmul.f32 %v1451_v11, %v532_v14 }
 0x727   :  { %536 = vrot.lane.b32.xlu1 %v534_v15, %s1623_s3 }
 0x799   :  { %v537_v17 = vpop.permute.xlu1 %536 }
 0x79a   :  { %v539_v18 = vadd.f32 %v537_v17, %v529_v16 }
 0x79c   :  { %1452 = vtanh.f32 %v539_v18 }
 0x7a6   :  { %v1453_v19 = vpop.eup %1452 }
 0x7a7   :  { %542 = vrot.lane.b32.xlu0 %v1453_v19, %s1622_s10 }
 0x819   :  { %v543_v20 = vpop.permute.xlu0 %542 }
 0x81a   :  { %v545_v21 = vmul.f32 %v1451_v11, %v543_v20 }
 0x81c   :  { %549 = vrot.lane.b32.xlu1 %v545_v21, %s1623_s3 }
 0x88e   :  { %v550_v22 = vpop.permute.xlu1 %549 }
 0x88f   :  { %1300 = vmatmul.mubr.msk.f32.vlgmr.msra.gmra.mrb[4].mxu1 %vm243_vm5, %v550_v22 }
 0x890   :  { %1395 = vmatpush3.bf16.msra.mxu1 %v1737_v8  ;;  %1321 = vmatprep.mubr.msk.f32.mxu1 %vm1619_vm0, %v1620_v1 }
 0x891   :  { %1396 = vmatprep.subr.bf16.mxu1 %v1618_v0 }
 0x894   :  { %1398 = vmatpush3.bf16.msra.mxu1 %v1741_v12 }
 0x895   :  { %1405 = vmatprep.subr.bf16.mxu1 %v1618_v0 }
 0x962   :  { %v619_v24 = vpop.f32.mrb[4].mxu1 }
 0x963   :  { %v623_v25 = vadd.f32 %v619_v24, %v207_v23  ;;  %v1301_v26 = vpop.f32.mrb[5].mxu1 }
 0x965   :  { %1454 = vtanh.f32 %v623_v25  ;;  %v1176_v28 = vmul.f32 -1.442695, %v623_v25 }
 0x967   :  { %1456 = vpow2.f32 %v1176_v28 }
 0x96f   :  { %v1455_v27 = vpop.eup %1454 }
 0x970   :  { %633 = vrot.lane.b32.xlu0 %v1455_v27, %s1622_s10 }
 0x971   :  { %v1457_v29 = vpop.eup %1456 }
 0x972   :  { %v627_v30 = vadd.f32 1.0, %v1457_v29 }
 0x974   :  { %1458 = vrcp.f32 %v627_v30 }
 0x97e   :  { %v1459_v31 = vpop.eup %1458 }
 0x97f   :  { %v631_v34 = vmul.f32 %v1459_v31, %v539_v18  ;;  %v222_v18 = vadd.f32 %v1762_v13, %v1795_v62 }
 0x9e2   :  { %v634_v32 = vpop.permute.xlu0 %633 }
 0x9e3   :  { %v636_v33 = vmul.f32 %v1459_v31, %v634_v32 }
 0x9e5   :  { %638 = vrot.lane.b32.xlu1 %v636_v33, %s1623_s3 }
 0xa57   :  { %v639_v35 = vpop.permute.xlu1 %638 }
 0xa58   :  { %v641_v36 = vadd.f32 %v639_v35, %v631_v34  ;;  %v227_v34 = vadd.f32 %v1793_v61, %v1762_v13  ;;  %v1056_v61 = vld [vmem:[#allocation9] sm:$0xff] }
 0xa5a   :  { %1460 = vtanh.f32 %v641_v36 }
 0xa64   :  { %v1461_v37 = vpop.eup %1460 }
 0xa65   :  { %644 = vrot.lane.b32.xlu0 %v1461_v37, %s1622_s10 }
 0xad7   :  { %v645_v38 = vpop.permute.xlu0 %644 }
 0xad8   :  { %v647_v39 = vmul.f32 %v1459_v31, %v645_v38 }
 0xada   :  { %651 = vrot.lane.b32.xlu1 %v647_v39, %s1623_s3 }
 0xb4c   :  { %v652_v40 = vpop.permute.xlu1 %651 }
 0xb4d   :  { %1311 = vmatmul.mubr.msk.f32.vlgmr.msra.gmra.mrb[10].mxu0 %vm243_vm5, %v652_v40 }
 0xb4e   :  { %1401 = vmatpush3.bf16.msra.mxu0 %v1737_v8  ;;  %1332 = vmatprep.mubr.msk.f32.mxu0 %vm1619_vm0, %v1620_v1 }
 0xb4f   :  { %1402 = vmatprep.subr.bf16.mxu0 %v1618_v0 }
 0xb52   :  { %1404 = vmatpush3.bf16.msra.mxu0 %v1741_v12 }
 0xb53   :  { %1411 = vmatprep.subr.bf16.mxu0 %v1618_v0 }
 0xc20   :  { %v721_v42 = vpop.f32.mrb[10].mxu0 }
 0xc21   :  { %v725_v43 = vadd.f32 %v721_v42, %v212_v41  ;;  %v1312_v44 = vpop.f32.mrb[11].mxu0 }
 0xc23   :  { %1462 = vtanh.f32 %v725_v43  ;;  %v1178_v46 = vmul.f32 -1.442695, %v725_v43 }
 0xc25   :  { %1464 = vpow2.f32 %v1178_v46 }
 0xc2d   :  { %v1463_v45 = vpop.eup %1462 }
 0xc2e   :  { %735 = vrot.lane.b32.xlu0 %v1463_v45, %s1622_s10 }
 0xc2f   :  { %v1465_v47 = vpop.eup %1464 }
 0xc30   :  { %v729_v48 = vadd.f32 1.0, %v1465_v47  ;;  %v1057_v47 = vld [vmem:[#allocation9 + $0x8] sm:$0xff] }
 0xc32   :  { %1466 = vrcp.f32 %v729_v48  ;;  %v1058_v48 = vld [vmem:[#allocation9 + $0x10] sm:$0xff] }
 0xc3c   :  { %v1467_v49 = vpop.eup %1466 }
 0xc3d   :  { %v733_v52 = vmul.f32 %v1467_v49, %v641_v36 }
 0xca0   :  { %v736_v50 = vpop.permute.xlu0 %735 }
 0xca1   :  { %v738_v51 = vmul.f32 %v1467_v49, %v736_v50  ;;  %v1059_v50 = vld [vmem:[#allocation9 + $0x18] sm:$0xff] }
 0xca3   :  { %740 = vrot.lane.b32.xlu1 %v738_v51, %s1623_s3  ;;  %v1415_v51 = vpack.c.bf16 %v1059_v50, %v1058_v48 }
 0xd15   :  { %v741_v53 = vpop.permute.xlu1 %740 }
 0xd16   :  { %v743_v54 = vadd.f32 %v741_v53, %v733_v52 }
 0xd18   :  { %1468 = vtanh.f32 %v743_v54 }
 0xd22   :  { %v1469_v55 = vpop.eup %1468 }
 0xd23   :  { %746 = vrot.lane.b32.xlu0 %v1469_v55, %s1622_s10 }
 0xd95   :  { %v747_v56 = vpop.permute.xlu0 %746 }
 0xd96   :  { %v749_v57 = vmul.f32 %v1467_v49, %v747_v56  ;;  %v1412_v49 = vpack.c.bf16 %v1057_v47, %v1056_v61  ;;  %v1185_v56 = vld [vmem:[%s1884_s5] ss:$0 sm:$0xff] }
 0xd98   :  { %753 = vrot.lane.b32.xlu1 %v749_v57, %s1623_s3 }
 0xe0a   :  { %v754_v58 = vpop.permute.xlu1 %753 }
 0xe0b   :  { %1322 = vmatmul.mubr.msk.f32.vlgmr.msra.gmra.mrb[6].mxu1 %vm243_vm5, %v754_v58 }
 0xe0c   :  { %1407 = vmatpush3.bf16.msra.mxu1 %v1737_v8  ;;  %1343 = vmatprep.mubr.msk.f32.mxu1 %vm1619_vm0, %v1620_v1 }
 0xe0d   :  { %1408 = vmatprep.subr.bf16.mxu1 %v1618_v0 }
 0xe10   :  { %1410 = vmatpush3.bf16.msra.mxu1 %v1741_v12 }
 0xede   :  { %v823_v63 = vpop.f32.mrb[6].mxu1 }
 0xedf   :  { %v827_v2 = vadd.f32 %v823_v63, %v217_v60  ;;  %v1323_v3 = vpop.f32.mrb[7].mxu1 }
 0xee1   :  { %1470 = vtanh.f32 %v827_v2  ;;  %v1180_v5 = vmul.f32 -1.442695, %v827_v2 }
 0xee3   :  { %1472 = vpow2.f32 %v1180_v5 }
 0xeeb   :  { %v1471_v4 = vpop.eup %1470 }
 0xeec   :  { %837 = vrot.lane.b32.xlu0 %v1471_v4, %s1622_s10 }
 0xeed   :  { %v1473_v8 = vpop.eup %1472 }
 0xeee   :  { %v831_v6 = vadd.f32 1.0, %v1473_v8 }
 0xef0   :  { %1474 = vrcp.f32 %v831_v6 }
 0xefa   :  { %v1475_v7 = vpop.eup %1474 }
 0xefb   :  { %v835_v12 = vmul.f32 %v1475_v7, %v743_v54 }
 0xf5e   :  { %v838_v9 = vpop.permute.xlu0 %837 }
 0xf5f   :  { %v840_v10 = vmul.f32 %v1475_v7, %v838_v9 }
 0xf61   :  { %842 = vrot.lane.b32.xlu1 %v840_v10, %s1623_s3 }
 0xfd3   :  { %v843_v11 = vpop.permute.xlu1 %842 }
 0xfd4   :  { %v845_v59 = vadd.f32 %v843_v11, %v835_v12 }
 0xfd6   :  { %1476 = vtanh.f32 %v845_v59 }
 0xfe0   :  { %v1477_v14 = vpop.eup %1476 }
 0xfe1   :  { %848 = vrot.lane.b32.xlu0 %v1477_v14, %s1622_s10 }
0x1053   :  { %v849_v15 = vpop.permute.xlu0 %848 }
0x1054   :  { %v851_v16 = vmul.f32 %v1475_v7, %v849_v15 }
0x1056   :  { %855 = vrot.lane.b32.xlu1 %v851_v16, %s1623_s3 }
0x10c8   :  { %v856_v17 = vpop.permute.xlu1 %855 }
0x10c9   :  { %1333 = vmatmul.mubr.msk.f32.vlgmr.msra.gmra.mrb[12].mxu0 %vm243_vm5, %v856_v17 }
0x10ca   :  { %1354 = vmatprep.mubr.msk.f32.mxu0 %vm1619_vm0, %v1620_v1  ;;  %1413 = vmatpush3.bf16.msra.mxu0 %v1412_v49 }
0x10cb   :  { %1414 = vmatprep.subr.bf16.mxu0 %v1618_v0 }
0x10ce   :  { %1416 = vmatpush3.bf16.msra.mxu0 %v1415_v51 }
0x119c   :  { %v925_v19 = vpop.f32.mrb[12].mxu0 }
0x119d   :  { %v929_v20 = vadd.f32 %v925_v19, %v222_v18  ;;  %v1334_v21 = vpop.f32.mrb[13].mxu0 }
0x119f   :  { %1478 = vtanh.f32 %v929_v20  ;;  %v1182_v23 = vmul.f32 -1.442695, %v929_v20 }
0x11a1   :  { %1480 = vpow2.f32 %v1182_v23 }
0x11a9   :  { %v1479_v22 = vpop.eup %1478 }
0x11aa   :  { %939 = vrot.lane.b32.xlu0 %v1479_v22, %s1622_s10 }
0x11ab   :  { %v1481_v24 = vpop.eup %1480 }
0x11ac   :  { %v933_v25 = vadd.f32 1.0, %v1481_v24 }
0x11ae   :  { %1482 = vrcp.f32 %v933_v25 }
0x11b8   :  { %v1483_v26 = vpop.eup %1482 }
0x11b9   :  { %v937_v1 = vmul.f32 %v1483_v26, %v845_v59 }
0x121c   :  { %v940_v27 = vpop.permute.xlu0 %939 }
0x121d   :  { %v942_v28 = vmul.f32 %v1483_v26, %v940_v27 }
0x121f   :  { %944 = vrot.lane.b32.xlu1 %v942_v28, %s1623_s3 }
0x1291   :  { %v945_v29 = vpop.permute.xlu1 %944 }
0x1292   :  { %v947_v62 = vadd.f32 %v945_v29, %v937_v1 }
0x1294   :  { %1484 = vtanh.f32 %v947_v62 }
0x129e   :  { %v1485_v30 = vpop.eup %1484 }
0x129f   :  { %950 = vrot.lane.b32.xlu0 %v1485_v30, %s1622_s10 }
0x1311   :  { %v951_v31 = vpop.permute.xlu0 %950 }
0x1312   :  { %v953_v32 = vmul.f32 %v1483_v26, %v951_v31 }
0x1314   :  { %957 = vrot.lane.b32.xlu1 %v953_v32, %s1623_s3 }
0x1386   :  { %v958_v33 = vpop.permute.xlu1 %957 }
0x1387   :  { %1344 = vmatmul.mubr.msk.f32.vlgmr.msra.gmra.mrb[8].mxu1 %vm243_vm5, %v958_v33 }
0x145a   :  { %v1027_v35 = vpop.f32.mrb[8].mxu1 }
0x145b   :  { %v1031_v36 = vadd.f32 %v1027_v35, %v227_v34  ;;  %v1345_v37 = vpop.f32.mrb[9].mxu1 }
0x145d   :  { %1486 = vtanh.f32 %v1031_v36  ;;  %v1184_v39 = vmul.f32 -1.442695, %v1031_v36 }
0x145f   :  { %1488 = vpow2.f32 %v1184_v39 }
0x1467   :  { %v1487_v38 = vpop.eup %1486 }
0x1468   :  { %1041 = vrot.lane.b32.xlu0 %v1487_v38, %s1622_s10 }
0x1469   :  { %v1489_v40 = vpop.eup %1488 }
0x146a   :  { %v1035_v41 = vadd.f32 1.0, %v1489_v40 }
0x146c   :  { %1490 = vrcp.f32 %v1035_v41 }
0x1476   :  { %v1491_v42 = vpop.eup %1490 }
0x1477   :  { %v1039_v45 = vmul.f32 %v1491_v42, %v947_v62 }
0x14da   :  { %v1042_v43 = vpop.permute.xlu0 %1041 }
0x14db   :  { %v1044_v44 = vmul.f32 %v1491_v42, %v1042_v43 }
0x14dd   :  { %1046 = vrot.lane.b32.xlu1 %v1044_v44, %s1623_s3 }
0x154f   :  { %v1047_v46 = vpop.permute.xlu1 %1046 }
0x1550   :  { %v1049_v13 = vadd.f32 %v1047_v46, %v1039_v45 }
0x1552   :  { %1492 = vtanh.f32 %v1049_v13 }
0x155c   :  { %v1493_v52 = vpop.eup %1492 }
0x155d   :  { %1052 = vrot.lane.b32.xlu0 %v1493_v52, %s1622_s10 }
0x15cf   :  { %v1053_v53 = vpop.permute.xlu0 %1052 }
0x15d0   :  { %v1055_v54 = vmul.f32 %v1491_v42, %v1053_v53 }
0x15d2   :  { %1068 = vrot.lane.b32.xlu1 %v1055_v54, %s1623_s3 }
0x1644   :  { %v1069_v55 = vpop.permute.xlu1 %1068 }
0x1645   :  { %1355 = vmatmul.mubr.msk.f32.vlgmr.msra.gmra.mrb[14].mxu0 %vm243_vm5, %v1069_v55 }
0x1718   :  { %v1138_v57 = vpop.f32.mrb[14].mxu0 }
0x1719   :  { %v1139_v58 = vadd.f32 %v1185_v56, %v1138_v57  ;;  %v1356_v0 = vpop.f32.mrb[15].mxu0 }
0x171b   :  { %1142 = vst [vmem:[#allocation11] sm:$0xff] %v1139_v58 }
0x171c   :  { %1593 = shalt.err (!%p1590_p8)
}
0x171d   :  { %s1594_s29 = scalar_lea.hbm %s1885_s6, 128 }
0x171e   :  { %p1595_p9 = scmp.ne.s32.totalorder %s1885_s6, %s1594_s29  ;;  %p1598_p10 = scmp.lt.u32.totalorder %s1594_s29, %s1885_s6 }
0x1720   :  { %p1600_p11 = pnand %p1598_p10, %p1595_p9 }
0x1722   :  { %1603 = shalt.err (!%p1600_p11)
}
0x1723   :  { %1152 = dma.vmem_to_hbm [thread:$0]  %s1150_s25, 128, %s1885_s6, [#allocation5]  }
0x1724   :  { %1610 = dma.done.wait [#allocation5], 128  }
0x1725   :  { %1611 = vsyncadd [#allocation5], 4294967168 }
0x1726   :  { %1156 = vsyncpa [#allocation4], 1 }
0x1727   :  { %1157 = vsyncpa [#allocation7], 1 }
0x1728   :  { %1158 = vsyncpa [#allocation10], 1 }
0x1729   :  { %1159 = vsyncpa [#allocation5], 1 }

</bundles_post_ra>
